<compile_context>
chip_gen: v7x
topology: tpu7x:2x2x1
jax: 0.10.0
libtpu: 0.0.40
codegen_flags: <defaults>
</compile_context>

<pallas_src>
import math

import jax
import jax.numpy as jnp
from jax.experimental import pallas as pl
from jax.experimental.pallas import tpu as pltpu


def _lane_dense_view(total: int):
    """Factor `total` into (rows, lanes).

    A wide 128-multiple last dim keeps the copy region tidy; if the total is
    not 128-divisible we fall back to a single (1, total) row, which is safe
    here because the copy never touches VMEM (pure HBM->HBM DMA).
    """
    for lanes in (2048, 1024, 512, 256, 128):
        if total % lanes == 0:
            return total // lanes, lanes
    return 1, total


def _split_rows(rows: int, n: int):
    """Split `rows` into `n` contiguous (start, size) pieces (all size >= 1)."""
    base, rem = divmod(rows, n)
    pieces, start = [], 0
    for i in range(n):
        size = base + (1 if i < rem else 0)
        pieces.append((start, size))
        start += size
    return pieces


def _plan_parts(rows: int, bytes_total: int):
    """Pick (num_parts, chunks_per_part).

    num_parts = grid steps (>= 2 lets v7x's two TensorCores each drive DMAs);
    chunks_per_part = DMAs kept in flight within one grid step.
    Small tensors use a single step / single DMA to avoid per-step overhead.
    """
    if bytes_total >= (1 << 20) and rows >= 4:
        return 2, 2
    if bytes_total >= (64 << 10) and rows >= 2:
        return 1, 2
    return 1, 1


def _make_copy_kernel(part_chunks):
    """Kernel: chunked HBM->HBM DMA copy; grid step p handles part_chunks[p]."""
    num_parts = len(part_chunks)

    def kernel(x_hbm, o_hbm, sems):
        pid = pl.program_id(0)
        for p, chunks in enumerate(part_chunks):

            def copy_part(p=p, chunks=chunks):
                copies = []
                # Start all chunk DMAs for this part (kept in flight), then wait.
                for c, (start, size) in enumerate(chunks):
                    cp = pltpu.make_async_copy(
                        x_hbm.at[start:start + size, :],
                        o_hbm.at[start:start + size, :],
                        sems.at[p, c],
                    )
                    cp.start()
                    copies.append(cp)
                for cp in copies:
                    cp.wait()

            if num_parts == 1:
                copy_part()
            else:
                pl.when(pid == p)(copy_part)

    return kernel


@jax.jit
def identity(x: jax.Array) -> jax.Array:
    """Identity forward pass: returns x unchanged (same shape, same dtype).

    NOTE: the zero-cost version is `jax.jit(lambda x: x, donate_argnums=0)`
    (no kernel, no copy at all); this wrapper instead materializes exactly one
    copy via HBM->HBM DMA so a Pallas kernel actually runs, without the
    defensive-copy penalty the previous aliased version paid.
    """
    shape = x.shape
    dtype = x.dtype
    total = math.prod(shape) if shape else 1

    # Degenerate empty tensor: nothing to copy.
    if total == 0:
        return x

    rows, lanes = _lane_dense_view(total)
    x2d = x.reshape((rows, lanes))

    itemsize = jnp.dtype(dtype).itemsize
    bytes_total = total * itemsize

    num_parts, chunks_per_part = _plan_parts(rows, bytes_total)
    flat_chunks = _split_rows(rows, num_parts * chunks_per_part)
    part_chunks = [
        flat_chunks[p * chunks_per_part:(p + 1) * chunks_per_part]
        for p in range(num_parts)
    ]

    out2d = pl.pallas_call(
        _make_copy_kernel(part_chunks),
        out_shape=jax.ShapeDtypeStruct((rows, lanes), dtype),
        grid_spec=pltpu.PrefetchScalarGridSpec(
            num_scalar_prefetch=0,
            grid=(num_parts,),
            in_specs=[pl.BlockSpec(memory_space=pl.ANY)],
            out_specs=pl.BlockSpec(memory_space=pl.ANY),
            scratch_shapes=[
                pltpu.SemaphoreType.DMA((num_parts, chunks_per_part)),
            ],
        ),
        compiler_params=pltpu.CompilerParams(
            dimension_semantics=("parallel",),
        ),
        cost_estimate=pl.CostEstimate(
            flops=0, transcendentals=0, bytes_accessed=2 * bytes_total,
        ),
    )(x2d)

    return out2d.reshape(shape)


if __name__ == "__main__":
    key = jax.random.PRNGKey(0)
    k0, k1, k2 = jax.random.split(key, 3)

    # Primary check: small NCHW simCLR-style feature map (batch=2, C=4, 16x16).
    x = jax.random.normal(k0, (2, 4, 16, 16), dtype=jnp.float32)
    y = identity(x)
    jax.block_until_ready(y)
    assert y.shape == x.shape, f"shape mismatch: {y.shape} vs {x.shape}"
    assert y.dtype == x.dtype, f"dtype mismatch: {y.dtype} vs {x.dtype}"
    assert bool(jnp.all(y == x)), "identity output differs from input"

    # Non-128-divisible fallback path: (1, total) single contiguous DMA.
    x_odd = jax.random.normal(k1, (3, 7, 5), dtype=jnp.float32)
    y_odd = identity(x_odd)
    jax.block_until_ready(y_odd)
    assert y_odd.shape == x_odd.shape and y_odd.dtype == x_odd.dtype
    assert bool(jnp.all(y_odd == x_odd)), "odd-shape identity differs"

    # Multi-part / multi-chunk path: 2 'parallel' grid steps x 2 DMAs in flight.
    x_big = jax.random.normal(k2, (1024, 512), dtype=jnp.float32)  # 2 MiB
    y_big = identity(x_big)
    jax.block_until_ready(y_big)
    assert y_big.shape == x_big.shape and y_big.dtype == x_big.dtype
    assert bool(jnp.all(y_big == x_big)), "chunked identity differs"

    print("KERNEL_OK")
</pallas_src>

<mosaic_0001>
module attributes {stable_mosaic.version = 11 : i64} {
  func.func @kernel(%arg0: i32, %arg1: memref<1x2048xf32, #tpu.memory_space<any>>, %arg2: memref<1x2048xf32, #tpu.memory_space<any>>, %arg3: memref<1x1x!tpu.dma_semaphore, #tpu.memory_space<semaphore_mem>>) attributes {dimension_semantics = [#tpu.dimension_semantics<parallel>], iteration_bounds = array<i64: 1>, scalar_prefetch = 0 : i64, scratch_operands = 1 : i64, tpu.core_type = #tpu.core_type<tc>, window_params = [{}, {}]} {
    %c0_i32 = arith.constant 0 : i32
    %c0_i32_0 = arith.constant 0 : i32
    %c0_i32_1 = arith.constant 0 : i32
    %c0_i32_2 = arith.constant 0 : i32
    %0 = tpu.memref_slice %arg1[%c0_i32_1, %c0_i32_2] : memref<1x2048xf32, #tpu.memory_space<any>> -> memref<1x2048xf32, #tpu.memory_space<any>>
    %c0_i32_3 = arith.constant 0 : i32
    %c0_i32_4 = arith.constant 0 : i32
    %1 = tpu.memref_slice %arg2[%c0_i32_3, %c0_i32_4] : memref<1x2048xf32, #tpu.memory_space<any>> -> memref<1x2048xf32, #tpu.memory_space<any>>
    %2 = tpu.memref_slice %arg3[%c0_i32, %c0_i32_0] : memref<1x1x!tpu.dma_semaphore, #tpu.memory_space<semaphore_mem>> -> memref<1x1x!tpu.dma_semaphore, #tpu.memory_space<semaphore_mem>>
    %3 = tpu.memref_squeeze %2 : memref<1x1x!tpu.dma_semaphore, #tpu.memory_space<semaphore_mem>> -> memref<!tpu.dma_semaphore, #tpu.memory_space<semaphore_mem>>
    tpu.enqueue_dma source(%0 : memref<1x2048xf32, #tpu.memory_space<any>>) target(%1 : memref<1x2048xf32, #tpu.memory_space<any>>) target_semaphore(%3 : memref<!tpu.dma_semaphore, #tpu.memory_space<semaphore_mem>>)
    %c0_i32_5 = arith.constant 0 : i32
    %c0_i32_6 = arith.constant 0 : i32
    %c0_i32_7 = arith.constant 0 : i32
    %c0_i32_8 = arith.constant 0 : i32
    %4 = tpu.memref_slice %arg1[%c0_i32_7, %c0_i32_8] : memref<1x2048xf32, #tpu.memory_space<any>> -> memref<1x2048xf32, #tpu.memory_space<any>>
    %c0_i32_9 = arith.constant 0 : i32
    %c0_i32_10 = arith.constant 0 : i32
    %5 = tpu.memref_slice %arg2[%c0_i32_9, %c0_i32_10] : memref<1x2048xf32, #tpu.memory_space<any>> -> memref<1x2048xf32, #tpu.memory_space<any>>
    %6 = tpu.memref_slice %arg3[%c0_i32_5, %c0_i32_6] : memref<1x1x!tpu.dma_semaphore, #tpu.memory_space<semaphore_mem>> -> memref<1x1x!tpu.dma_semaphore, #tpu.memory_space<semaphore_mem>>
    %7 = tpu.memref_squeeze %6 : memref<1x1x!tpu.dma_semaphore, #tpu.memory_space<semaphore_mem>> -> memref<!tpu.dma_semaphore, #tpu.memory_space<semaphore_mem>>
    tpu.wait_dma2 semaphore(%7 : memref<!tpu.dma_semaphore, #tpu.memory_space<semaphore_mem>>) src(%4 : memref<1x2048xf32, #tpu.memory_space<any>>) dst(%5 : memref<1x2048xf32, #tpu.memory_space<any>>)
    return
  }
}

</mosaic_0001>

<bundles_post_ra>
// kernel: identity.1
= control target key start
LH: loop header
LB: loop body
LE: loop exit
PB: predicated region body
PF: predicated region fallthrough
CT: control target
= control target key end

     0   :  { %s92_s0 = inlined_call_operand.vmem [shape: f32[1,2048], index: 0, kind: input, shape index: {}]   ;;  %s93_s1 = inlined_call_operand.vmem [shape: f32[1,2048], index: 1, kind: output, shape index: {}]  }
   0x1   :  { %v38_v0 = vld [vmem:[%s92_s0] sm:$0xff]  ;;  %v40_v1 = vld [vmem:[%s92_s0 + $0x8] sm:$0xff] }
   0x2   :  { %39 = vst [vmem:[%s93_s1] sm:$0xff] %v38_v0  ;;  %41 = vst [vmem:[%s93_s1 + $0x8] sm:$0xff] %v40_v1 }
   0x3   :  { %49 = vsyncadd [#allocation2], 256 }
   0x4   :  { %68 = dma.done.wait [#allocation2], 256 }
   0x5   :  { %69 = vsyncadd [#allocation2], 4294967040 }
   0x6   :  { %53 = vsyncmov [#allocation2] }
   0x9   :  { %s54_s14 = vpop.sfrf %53 }
   0xa   :  { %p67_p0 = scmp.ne.s32.totalorder %s54_s14, 0 }
   0xc   :  { %58 = shalt.err (%p67_p0)  }

</bundles_post_ra>
